<compile_context>
chip_gen: v7x
topology: tpu7x:2x2x1
jax: 0.10.0
libtpu: 0.0.40
codegen_flags: <defaults>
</compile_context>

<pallas_src>
import functools

import jax
import jax.numpy as jnp
from jax.experimental import pallas as pl
from jax.experimental.pallas import tpu as pltpu


def _silu(v):
    return v * jax.nn.sigmoid(v)


def _round_up(n, m):
    return ((n + m - 1) // m) * m


# --------------------------------------------------------------------------
# Kernel
# --------------------------------------------------------------------------
def _block_kernel(x_ref, emb_ref, vec_ref, wcat_ref, win_ref, wout_ref, o_ref,
                  *, size, hidden, mxu_dtype):
    x = x_ref[...].astype(jnp.float32)
    emb = emb_ref[...].astype(jnp.float32)

    # Packed small-vector slab (f32): row 0/1 = ln gamma/beta, row 2 =
    # ff_b + ff_emb_b, row 3 = ff_in_b, row 4 = ff_out_b.
    gamma = vec_ref[0:1, :size]
    beta = vec_ref[1:2, :size]
    b_cat = vec_ref[2:3, :hidden]
    b_in = vec_ref[3:4, :hidden]
    b_out = vec_ref[4:5, :size]

    # LayerNorm (biased variance, eps=1e-5, matches PyTorch default).
    mu = jnp.mean(x, axis=-1, keepdims=True)
    var = jnp.mean((x - mu) * (x - mu), axis=-1, keepdims=True)
    xn = (x - mu) * jax.lax.rsqrt(var + 1e-5) * gamma + beta

    # Fused  h = ff(silu(ln(x))) + ff_emb(emb)  as one dot:
    #   concat([silu(xn), emb]) @ [Wff.T ; Wemb.T] + (bff + bemb)
    cat = jnp.concatenate([_silu(xn), emb], axis=-1)          # (TM, 2S)
    h = jnp.dot(cat.astype(mxu_dtype), wcat_ref[...],
                preferred_element_type=jnp.float32) + b_cat

    h = _silu(h)
    h = _silu(jnp.dot(h.astype(mxu_dtype), win_ref[...],
                      preferred_element_type=jnp.float32) + b_in)
    h = jnp.dot(h.astype(mxu_dtype), wout_ref[...],
                preferred_element_type=jnp.float32) + b_out

    # Residual (kept f32).
    o_ref[...] = (x + h).astype(o_ref.dtype)


# --------------------------------------------------------------------------
# One-time parameter preparation (transposes / packing happen here, NOT per call)
# --------------------------------------------------------------------------
def prepare_block_params(params, mxu_dtype=jnp.float32):
    S = params["ln_g"].shape[0]
    H = params["ff_b"].shape[0]
    Hm = max(S, H)

    # Stacked [in, out] weight for the fused ff / ff_emb matmul.
    w_cat = jnp.concatenate([params["ff_w"].T, params["ff_emb_w"].T],
                            axis=0).astype(mxu_dtype)          # (2S, H)
    w_in = params["ff_in_w"].T.astype(mxu_dtype)               # (H, H)
    w_out = params["ff_out_w"].T.astype(mxu_dtype)             # (H, S)

    # Pack all small vectors into one f32 slab (8 sublanes for clean layout).
    vec = jnp.zeros((8, Hm), jnp.float32)
    vec = vec.at[0, :S].set(params["ln_g"])
    vec = vec.at[1, :S].set(params["ln_b"])
    vec = vec.at[2, :H].set(params["ff_b"] + params["ff_emb_b"])
    vec = vec.at[3, :H].set(params["ff_in_b"])
    vec = vec.at[4, :S].set(params["ff_out_b"])

    return {"w_cat": w_cat, "w_in": w_in, "w_out": w_out, "vec": vec,
            "size": S, "hidden": H, "mxu_dtype": mxu_dtype}


# --------------------------------------------------------------------------
# Wrapper
# --------------------------------------------------------------------------
def block_forward(x, emb, prep, *, row_tile=256):
    """x, emb: [B, S].  `prep` comes from prepare_block_params (once)."""
    B, S = x.shape
    H = prep["hidden"]
    assert S == prep["size"]

    # Row tiling: TM rows per grid step (multiple of 8 sublanes).
    TM = min(row_tile, _round_up(B, 8))
    Bp = _round_up(B, TM)
    if Bp != B:
        pad = Bp - B
        x_p = jnp.pad(x, ((0, pad), (0, 0)))
        emb_p = jnp.pad(emb, ((0, pad), (0, 0)))
    else:
        x_p, emb_p = x, emb

    grid = (Bp // TM,)
    kernel = functools.partial(_block_kernel, size=S, hidden=H,
                               mxu_dtype=prep["mxu_dtype"])

    w_bytes = (prep["w_cat"].size + prep["w_in"].size + prep["w_out"].size) \
        * prep["w_cat"].dtype.itemsize
    cost = pl.CostEstimate(
        flops=2 * Bp * (2 * S * H + H * H + H * S),
        transcendentals=Bp * (S + 2 * H),
        bytes_accessed=3 * Bp * S * 4 + prep["vec"].size * 4 + w_bytes,
    )

    row_spec = pl.BlockSpec((TM, S), lambda i: (i, 0))
    const = lambda shape: pl.BlockSpec(shape, lambda i: (0, 0))

    out = pl.pallas_call(
        kernel,
        out_shape=jax.ShapeDtypeStruct((Bp, S), x.dtype),
        grid_spec=pltpu.PrefetchScalarGridSpec(
            num_scalar_prefetch=0,
            grid=grid,
            in_specs=[
                row_spec,                       # x
                row_spec,                       # emb
                const(prep["vec"].shape),       # packed ln/bias slab
                const(prep["w_cat"].shape),     # fused ff/ff_emb weight
                const(prep["w_in"].shape),      # ff_in weight
                const(prep["w_out"].shape),     # ff_out weight
            ],
            out_specs=row_spec,
        ),
        compiler_params=pltpu.CompilerParams(
            dimension_semantics=("parallel",),
            vmem_limit_bytes=48 * 1024 * 1024,   # safe on v5e/v6e (128 MiB) and v7x (64 MiB)
        ),
        cost_estimate=cost,
    )(x_p, emb_p, prep["vec"], prep["w_cat"], prep["w_in"], prep["w_out"])

    return out[:B] if Bp != B else out


# --------------------------------------------------------------------------
# Pure-JAX reference + param init (mirror the PyTorch module)
# --------------------------------------------------------------------------
def block_reference(x, emb, params):
    mu = jnp.mean(x, axis=-1, keepdims=True)
    var = jnp.mean((x - mu) ** 2, axis=-1, keepdims=True)
    xn = (x - mu) / jnp.sqrt(var + 1e-5) * params["ln_g"] + params["ln_b"]
    silu = lambda v: v * jax.nn.sigmoid(v)
    h = silu(xn) @ params["ff_w"].T + params["ff_b"]
    h = h + (emb @ params["ff_emb_w"].T + params["ff_emb_b"])
    h = silu(h)
    h = silu(h @ params["ff_in_w"].T + params["ff_in_b"])
    h = h @ params["ff_out_w"].T + params["ff_out_b"]
    return x + h


def init_params(key, size, widen_factor=2):
    hidden = size * widen_factor
    ks = jax.random.split(key, 8)
    scale_s = 1.0 / jnp.sqrt(size)
    scale_h = 1.0 / jnp.sqrt(hidden)
    return {
        "ff_w": jax.random.uniform(ks[0], (hidden, size), jnp.float32, -scale_s, scale_s),
        "ff_b": jax.random.uniform(ks[1], (hidden,), jnp.float32, -scale_s, scale_s),
        "ff_emb_w": jax.random.uniform(ks[2], (hidden, size), jnp.float32, -scale_s, scale_s),
        "ff_emb_b": jax.random.uniform(ks[3], (hidden,), jnp.float32, -scale_s, scale_s),
        "ff_in_w": jax.random.uniform(ks[4], (hidden, hidden), jnp.float32, -scale_h, scale_h),
        "ff_in_b": jax.random.uniform(ks[5], (hidden,), jnp.float32, -scale_h, scale_h),
        "ff_out_w": jax.random.uniform(ks[6], (size, hidden), jnp.float32, -scale_h, scale_h),
        "ff_out_b": jax.random.uniform(ks[7], (size,), jnp.float32, -scale_h, scale_h),
        "ln_g": jnp.ones((size,), jnp.float32),
        "ln_b": jnp.zeros((size,), jnp.float32),
    }


if __name__ == "__main__":
    B, SIZE, WIDEN = 8, 32, 2
    key = jax.random.PRNGKey(0)
    kx, kemb, kp = jax.random.split(key, 3)
    x = jax.random.normal(kx, (B, SIZE), jnp.float32)
    emb = jax.random.normal(kemb, (B, SIZE), jnp.float32)
    params = init_params(kp, SIZE, WIDEN)

    ref = jax.block_until_ready(block_reference(x, emb, params))

    # f32 MXU-operand path (exact check against reference).
    prep_f32 = prepare_block_params(params, mxu_dtype=jnp.float32)
    out = jax.block_until_ready(block_forward(x, emb, prep_f32))
    assert out.shape == (B, SIZE)
    assert jnp.allclose(out, ref, atol=1e-4, rtol=1e-4), \
        f"f32 max err {jnp.max(jnp.abs(out - ref))}"

    # bf16 MXU-operand path (v6e/v7x native MXU path; MXU-only bf16 is also
    # fine on v5e since LayerNorm/SiLU/residual stay f32).  Loose tolerance.
    prep_bf16 = prepare_block_params(params, mxu_dtype=jnp.bfloat16)
    out_bf16 = jax.block_until_ready(block_forward(x, emb, prep_bf16))
    assert out_bf16.shape == (B, SIZE)
    assert jnp.all(jnp.isfinite(out_bf16))
    assert jnp.allclose(out_bf16, ref, atol=1e-1, rtol=1e-1), \
        f"bf16 max err {jnp.max(jnp.abs(out_bf16 - ref))}"

    print("KERNEL_OK")
</pallas_src>

<mosaic_0001>
module attributes {stable_mosaic.version = 11 : i64} {
  func.func @_block_kernel(%arg0: i32, %arg1: memref<8x32xf32, #tpu.memory_space<vmem>>, %arg2: memref<8x32xf32, #tpu.memory_space<vmem>>, %arg3: memref<8x64xf32, #tpu.memory_space<vmem>>, %arg4: memref<64x64xf32, #tpu.memory_space<vmem>>, %arg5: memref<64x64xf32, #tpu.memory_space<vmem>>, %arg6: memref<64x32xf32, #tpu.memory_space<vmem>>, %arg7: memref<8x32xf32, #tpu.memory_space<vmem>>) attributes {dimension_semantics = [#tpu.dimension_semantics<parallel>], iteration_bounds = array<i64: 1>, scalar_prefetch = 0 : i64, scratch_operands = 0 : i64, tpu.core_type = #tpu.core_type<tc>, window_params = [{transform_indices = @transform_0, window_bounds = array<i64: 8, 32>}, {transform_indices = @transform_1, window_bounds = array<i64: 8, 32>}, {pipeline_mode = #tpu.pipeline_mode<synchronous>, transform_indices = @transform_2, window_bounds = array<i64: 8, 64>}, {pipeline_mode = #tpu.pipeline_mode<synchronous>, transform_indices = @transform_3, window_bounds = array<i64: 64, 64>}, {pipeline_mode = #tpu.pipeline_mode<synchronous>, transform_indices = @transform_4, window_bounds = array<i64: 64, 64>}, {pipeline_mode = #tpu.pipeline_mode<synchronous>, transform_indices = @transform_5, window_bounds = array<i64: 64, 32>}, {transform_indices = @transform_6, window_bounds = array<i64: 8, 32>}]} {
    %c0 = arith.constant 0 : index
    %c0_0 = arith.constant 0 : index
    %0 = vector.load %arg1[%c0, %c0_0] : memref<8x32xf32, #tpu.memory_space<vmem>>, vector<8x32xf32>
    %c0_1 = arith.constant 0 : index
    %c0_2 = arith.constant 0 : index
    %1 = vector.load %arg2[%c0_1, %c0_2] : memref<8x32xf32, #tpu.memory_space<vmem>>, vector<8x32xf32>
    %c0_3 = arith.constant 0 : index
    %c0_4 = arith.constant 0 : index
    %2 = vector.load %arg3[%c0_3, %c0_4] : memref<8x64xf32, #tpu.memory_space<vmem>>, vector<1x32xf32>
    %c1 = arith.constant 1 : index
    %c0_5 = arith.constant 0 : index
    %3 = vector.load %arg3[%c1, %c0_5] : memref<8x64xf32, #tpu.memory_space<vmem>>, vector<1x32xf32>
    %c2 = arith.constant 2 : index
    %c0_6 = arith.constant 0 : index
    %4 = vector.load %arg3[%c2, %c0_6] : memref<8x64xf32, #tpu.memory_space<vmem>>, vector<1x64xf32>
    %c3 = arith.constant 3 : index
    %c0_7 = arith.constant 0 : index
    %5 = vector.load %arg3[%c3, %c0_7] : memref<8x64xf32, #tpu.memory_space<vmem>>, vector<1x64xf32>
    %c4 = arith.constant 4 : index
    %c0_8 = arith.constant 0 : index
    %6 = vector.load %arg3[%c4, %c0_8] : memref<8x64xf32, #tpu.memory_space<vmem>>, vector<1x32xf32>
    %cst = arith.constant dense<0.000000e+00> : vector<8xf32>
    %7 = vector.multi_reduction <add>, %0, %cst [1] : vector<8x32xf32> to vector<8xf32>
    %8 = vector.shape_cast %7 : vector<8xf32> to vector<8x1xf32>
    %cst_9 = arith.constant 3.200000e+01 : f32
    %9 = vector.broadcast %cst_9 : f32 to vector<8x1xf32>
    %10 = arith.divf %8, %9 : vector<8x1xf32>
    %11 = vector.broadcast %10 : vector<8x1xf32> to vector<8x32xf32>
    %12 = arith.subf %0, %11 : vector<8x32xf32>
    %13 = vector.broadcast %10 : vector<8x1xf32> to vector<8x32xf32>
    %14 = arith.subf %0, %13 : vector<8x32xf32>
    %15 = arith.mulf %12, %14 : vector<8x32xf32>
    %cst_10 = arith.constant dense<0.000000e+00> : vector<8xf32>
    %16 = vector.multi_reduction <add>, %15, %cst_10 [1] : vector<8x32xf32> to vector<8xf32>
    %17 = vector.shape_cast %16 : vector<8xf32> to vector<8x1xf32>
    %cst_11 = arith.constant 3.200000e+01 : f32
    %18 = vector.broadcast %cst_11 : f32 to vector<8x1xf32>
    %19 = arith.divf %17, %18 : vector<8x1xf32>
    %20 = vector.broadcast %10 : vector<8x1xf32> to vector<8x32xf32>
    %21 = arith.subf %0, %20 : vector<8x32xf32>
    %cst_12 = arith.constant 9.99999974E-6 : f32
    %22 = vector.broadcast %cst_12 : f32 to vector<8x1xf32>
    %23 = arith.addf %19, %22 : vector<8x1xf32>
    %24 = math.rsqrt %23 : vector<8x1xf32>
    %25 = vector.broadcast %24 : vector<8x1xf32> to vector<8x32xf32>
    %26 = arith.mulf %21, %25 : vector<8x32xf32>
    %27 = vector.broadcast %2 : vector<1x32xf32> to vector<8x32xf32>
    %28 = arith.mulf %26, %27 : vector<8x32xf32>
    %29 = vector.broadcast %3 : vector<1x32xf32> to vector<8x32xf32>
    %30 = arith.addf %28, %29 : vector<8x32xf32>
    %31 = arith.negf %30 : vector<8x32xf32>
    %32 = math.exp %31 : vector<8x32xf32>
    %cst_13 = arith.constant 1.000000e+00 : f32
    %33 = vector.broadcast %cst_13 : f32 to vector<8x32xf32>
    %34 = arith.addf %33, %32 : vector<8x32xf32>
    %35 = arith.divf %33, %34 : vector<8x32xf32>
    %36 = arith.mulf %30, %35 : vector<8x32xf32>
    %37 = tpu.concatenate %36, %1 in 1 : vector<8x32xf32>, vector<8x32xf32> -> vector<8x64xf32>
    %c0_14 = arith.constant 0 : index
    %c0_15 = arith.constant 0 : index
    %38 = vector.load %arg4[%c0_14, %c0_15] : memref<64x64xf32, #tpu.memory_space<vmem>>, vector<64x64xf32>
    %cst_16 = arith.constant dense<0.000000e+00> : vector<8x64xf32>
    %39 = tpu.matmul %37, %38, %cst_16 {dimension_numbers = #tpu.dot_dimension_numbers<[1], [0], [0], [1], [0, 0, 1, 1], [], []>} : vector<8x64xf32>, vector<64x64xf32>, vector<8x64xf32> -> vector<8x64xf32>
    %40 = vector.broadcast %4 : vector<1x64xf32> to vector<8x64xf32>
    %41 = arith.addf %39, %40 : vector<8x64xf32>
    %42 = arith.negf %41 : vector<8x64xf32>
    %43 = math.exp %42 : vector<8x64xf32>
    %cst_17 = arith.constant 1.000000e+00 : f32
    %44 = vector.broadcast %cst_17 : f32 to vector<8x64xf32>
    %45 = arith.addf %44, %43 : vector<8x64xf32>
    %46 = arith.divf %44, %45 : vector<8x64xf32>
    %47 = arith.mulf %41, %46 : vector<8x64xf32>
    %c0_18 = arith.constant 0 : index
    %c0_19 = arith.constant 0 : index
    %48 = vector.load %arg5[%c0_18, %c0_19] : memref<64x64xf32, #tpu.memory_space<vmem>>, vector<64x64xf32>
    %cst_20 = arith.constant dense<0.000000e+00> : vector<8x64xf32>
    %49 = tpu.matmul %47, %48, %cst_20 {dimension_numbers = #tpu.dot_dimension_numbers<[1], [0], [0], [1], [0, 0, 1, 1], [], []>} : vector<8x64xf32>, vector<64x64xf32>, vector<8x64xf32> -> vector<8x64xf32>
    %50 = vector.broadcast %5 : vector<1x64xf32> to vector<8x64xf32>
    %51 = arith.addf %49, %50 : vector<8x64xf32>
    %52 = arith.negf %51 : vector<8x64xf32>
    %53 = math.exp %52 : vector<8x64xf32>
    %cst_21 = arith.constant 1.000000e+00 : f32
    %54 = vector.broadcast %cst_21 : f32 to vector<8x64xf32>
    %55 = arith.addf %54, %53 : vector<8x64xf32>
    %56 = arith.divf %54, %55 : vector<8x64xf32>
    %57 = arith.mulf %51, %56 : vector<8x64xf32>
    %c0_22 = arith.constant 0 : index
    %c0_23 = arith.constant 0 : index
    %58 = vector.load %arg6[%c0_22, %c0_23] : memref<64x32xf32, #tpu.memory_space<vmem>>, vector<64x32xf32>
    %cst_24 = arith.constant dense<0.000000e+00> : vector<8x32xf32>
    %59 = tpu.matmul %57, %58, %cst_24 {dimension_numbers = #tpu.dot_dimension_numbers<[1], [0], [0], [1], [0, 0, 1, 1], [], []>} : vector<8x64xf32>, vector<64x32xf32>, vector<8x32xf32> -> vector<8x32xf32>
    %60 = vector.broadcast %6 : vector<1x32xf32> to vector<8x32xf32>
    %61 = arith.addf %59, %60 : vector<8x32xf32>
    %62 = arith.addf %0, %61 : vector<8x32xf32>
    %c0_25 = arith.constant 0 : index
    %c0_26 = arith.constant 0 : index
    %63 = vector.load %arg7[%c0_25, %c0_26] : memref<8x32xf32, #tpu.memory_space<vmem>>, vector<8x32xf32>
    tpu.vector_store %arg7[%c0_25, %c0_26], %62 {strides = array<i32>} : memref<8x32xf32, #tpu.memory_space<vmem>>, vector<8x32xf32>,
    return
  }
  func.func @transform_0(%arg0: i32) -> (i32, i32) {
    %c0_i32 = arith.constant 0 : i32
    %c0_i32_0 = arith.constant 0 : i32
    return %arg0, %c0_i32 : i32, i32
  }
  func.func @transform_1(%arg0: i32) -> (i32, i32) {
    %c0_i32 = arith.constant 0 : i32
    %c0_i32_0 = arith.constant 0 : i32
    return %arg0, %c0_i32 : i32, i32
  }
  func.func @transform_2(%arg0: i32) -> (i32, i32) {
    %c0_i32 = arith.constant 0 : i32
    %c0_i32_0 = arith.constant 0 : i32
    %c0_i32_1 = arith.constant 0 : i32
    return %c0_i32, %c0_i32_0 : i32, i32
  }
  func.func @transform_3(%arg0: i32) -> (i32, i32) {
    %c0_i32 = arith.constant 0 : i32
    %c0_i32_0 = arith.constant 0 : i32
    %c0_i32_1 = arith.constant 0 : i32
    return %c0_i32, %c0_i32_0 : i32, i32
  }
  func.func @transform_4(%arg0: i32) -> (i32, i32) {
    %c0_i32 = arith.constant 0 : i32
    %c0_i32_0 = arith.constant 0 : i32
    %c0_i32_1 = arith.constant 0 : i32
    return %c0_i32, %c0_i32_0 : i32, i32
  }
  func.func @transform_5(%arg0: i32) -> (i32, i32) {
    %c0_i32 = arith.constant 0 : i32
    %c0_i32_0 = arith.constant 0 : i32
    %c0_i32_1 = arith.constant 0 : i32
    return %c0_i32, %c0_i32_0 : i32, i32
  }
  func.func @transform_6(%arg0: i32) -> (i32, i32) {
    %c0_i32 = arith.constant 0 : i32
    %c0_i32_0 = arith.constant 0 : i32
    return %arg0, %c0_i32 : i32, i32
  }
}

</mosaic_0001>

<bundles_post_ra>
// kernel: tpu_custom_call.1
= control target key start
LH: loop header
LB: loop body
LE: loop exit
PB: predicated region body
PF: predicated region fallthrough
CT: control target
= control target key end

     0   :  { %11 = vsyncpa [#allocation3], 0  ;;  %s733_s0 = inlined_call_operand.vmem [shape: f32[8,32], index: 0, kind: input, shape index: {}]   ;;  %s734_s1 = inlined_call_operand.vmem [shape: f32[8,32], index: 1, kind: input, shape index: {}]   ;;  %s735_s2 = inlined_call_operand.vmem [shape: f32[8,64], index: 2, kind: input, shape index: {}]   ;;  %s736_s3 = inlined_call_operand.vmem [shape: f32[64,64], index: 3, kind: input, shape index: {}]   ;;  %s737_s4 = inlined_call_operand.hbm [shape: f32[64,64], index: 4, kind: input, shape index: {}]   ;;  %s738_s5 = inlined_call_operand.vmem [shape: f32[64,32], index: 5, kind: input, shape index: {}]   ;;  %s739_s6 = inlined_call_operand.hbm [shape: f32[8,32], index: 6, kind: output, shape index: {}]  }
   0x1   :  { %12 = vsyncpa [#allocation4], 0  ;;  %s570_s21 = smov [#allocation2]   ;;  %s522_s25 = scalar_lea.hbm %s737_s4, 1024 }
   0x2   :  { %s26_s22 = sshll.u32 %s570_s21, 4  ;;  %p523_p0 = scmp.ne.s32.totalorder %s737_s4, %s522_s25  ;;  %s27_s22 = int_to_ptr.vmem [resolvable:$true] %s26_s22 }
   0x3   :  { %p526_p1 = scmp.lt.u32.totalorder %s522_s25, %s737_s4 }
   0x5   :  { %p528_p2 = pnand %p526_p1, %p523_p0 }
   0x7   :  { %531 = shalt.err (!%p528_p2)
}
   0x8   :  { %s532_s30 = scalar_lea.vmem %s27_s22, 1024  ;;  %p537_p4 = scmp.lt.s32.totalorder %s27_s22, %s27_s22 }
   0x9   :  { %p533_p3 = scmp.ne.s32.totalorder %s27_s22, %s532_s30  ;;  %p538_p5 = scmp.lt.s32.totalorder %s532_s30, %s532_s30 }
   0xb   :  { %p539_p6 = por %p538_p5, %p537_p4 }
   0xd   :  { %p540_p7 = pnand %p539_p6, %p533_p3 }
   0xf   :  { %543 = shalt.err (!%p540_p7)
}
  0x10   :  { %s571_s7 = smov 128   ;;  %s572_s8 = smov 8  }
  0x11   :  { %32 = dma.hbm_to_vmem [thread:$0]  %s737_s4, 1024, %s27_s22, [#allocation3], %s571_s7, %s571_s7, %s572_s8  }
  0x12   :  { %566 = dma.done.wait [#allocation3], 1024  }
  0x13   :  { %567 = vsyncadd [#allocation3], 4294966272  ;;  %vm45_vm0 = vcmask 261120   ;;  %v628_v0 = vld [vmem:[%s733_s0] sm:$0xff]  ;;  %s573_s15 = smov 32   ;;  %v83_v9 = vld [vmem:[%s736_s3 + $0x8] sm:$0xff] }
  0x14   :  { %v46_v1 = vsel %vm45_vm0, %v628_v0, 0.0  ;;  %v39_v2 = vld [vmem:[%s734_s1] sm:$0xff]  ;;  %v84_v10 = vld [vmem:[%s736_s3 + $0x10] sm:$0xff]  ;;  %v574_v11 = vmov 0.0|0.0   ;;  %v85_v13 = vld [vmem:[%s736_s3 + $0x18] sm:$0xff]  ;;  %vm575_vm1 = vmmov 0  }
  0x15   :  { %47 = vadd.xlane.f32.xlu0 %v46_v1  ;;  %78 = vrot.lane.b32.xlu1 %v39_v2, %s573_s15  ;;  %v82_v8 = vld [vmem:[%s736_s3] sm:$0xff]  ;;  %v468_v14 = vpack.c.bf16 %v85_v13, %v84_v10  ;;  %v87_v16 = vld [vmem:[%s736_s3 + $0x28] sm:$0xff]  ;;  %v88_v18 = vld [vmem:[%s736_s3 + $0x30] sm:$0xff]  ;;  %v576_v21 = vmov 0.0   ;;  %vm94_vm2 = vcmask 523264   ;;  %s577_s26 = smov [#allocation5]  }
  0x16   :  { %464 = vmatprep.subr.bf16.mxu0 %v574_v11  ;;  %v465_v12 = vpack.c.bf16 %v83_v9, %v82_v8  ;;  %476 = vmatprep.subr.bf16.mxu1 %v574_v11  ;;  %v86_v15 = vld [vmem:[%s736_s3 + $0x20] sm:$0xff]  ;;  %v89_v19 = vld [vmem:[%s736_s3 + $0x38] sm:$0xff]  ;;  %v176_v39 = vld [vmem:[#allocation2 + $0x8] sm:$0xff]  ;;  %s360_s27 = sshll.u32 %s577_s26, 4  ;;  %s361_s27 = int_to_ptr.vmem [resolvable:$true] %s360_s27 }
  0x17   :  { %v471_v17 = vpack.c.bf16 %v87_v16, %v86_v15  ;;  %v474_v20 = vpack.c.bf16 %v89_v19, %v88_v18  ;;  %423 = vmatprep.mubr.msk.f32.mxu0 %vm575_vm1, %v576_v21  ;;  %442 = vmatprep.mubr.msk.f32.mxu1 %vm575_vm1, %v576_v21  ;;  %v369_v26 = vld [vmem:[%s735_s2] ss:$0 sm:$0xff]  ;;  %v370_v28 = vld [vmem:[%s735_s2 + $0x1] ss:$0 sm:$0xff]  ;;  %v177_v41 = vld [vmem:[#allocation2 + $0x10] sm:$0xff]  ;;  %s544_s28 = scalar_lea.vmem %s361_s27, 128  ;;  %p549_p9 = scmp.lt.s32.totalorder %s361_s27, %s361_s27 }
  0x18   :  { %466 = vmatpush3.bf16.msra.mxu0 %v465_v12  ;;  %v175_v38 = vld [vmem:[#allocation2] sm:$0xff]  ;;  %v178_v42 = vld [vmem:[#allocation2 + $0x18] sm:$0xff]  ;;  %v180_v45 = vld [vmem:[#allocation2 + $0x28] sm:$0xff]  ;;  %p545_p8 = scmp.ne.s32.totalorder %s361_s27, %s544_s28  ;;  %p550_p10 = scmp.lt.s32.totalorder %s544_s28, %s544_s28 }
  0x19   :  { %467 = vmatprep.subr.bf16.mxu0 %v574_v11  ;;  %v477_v40 = vpack.c.bf16 %v176_v39, %v175_v38  ;;  %v480_v43 = vpack.c.bf16 %v178_v42, %v177_v41  ;;  %v179_v44 = vld [vmem:[#allocation2 + $0x20] sm:$0xff]  ;;  %v181_v47 = vld [vmem:[#allocation2 + $0x30] sm:$0xff]  ;;  %v182_v48 = vld [vmem:[#allocation2 + $0x38] sm:$0xff] }
  0x1a   :  { %v483_v46 = vpack.c.bf16 %v180_v45, %v179_v44  ;;  %v486_v49 = vpack.c.bf16 %v182_v48, %v181_v47  ;;  %v372_v50 = vld [vmem:[%s735_s2 + $0x2] ss:$0 sm:$0xff]  ;;  %v268_v60 = vld [vmem:[%s738_s5 + $0x8] sm:$0xff]  ;;  %v269_v62 = vld [vmem:[%s738_s5 + $0x10] sm:$0xff]  ;;  %p551_p11 = por %p550_p10, %p549_p9 }
  0x1b   :  { %478 = vmatpush3.bf16.msra.mxu1 %v477_v40  ;;  %v267_v59 = vld [vmem:[%s738_s5] sm:$0xff]  ;;  %v270_v63 = vld [vmem:[%s738_s5 + $0x18] sm:$0xff] }
  0x1c   :  { %469 = vmatpush3.bf16.msra.mxu0 %v468_v14  ;;  %479 = vmatprep.subr.bf16.mxu1 %v574_v11  ;;  %v489_v61 = vpack.c.bf16 %v268_v60, %v267_v59  ;;  %v492_v1 = vpack.c.bf16 %v270_v63, %v269_v62  ;;  %v271_v2 = vld [vmem:[%s738_s5 + $0x20] sm:$0xff]  ;;  %p552_p12 = pnand %p551_p11, %p545_p8 }
  0x1d   :  { %470 = vmatprep.subr.bf16.mxu0 %v574_v11  ;;  %v375_v8 = vld [vmem:[%s735_s2 + $0x3] ss:$0 sm:$0xff] }
  0x1f   :  { %481 = vmatpush3.bf16.msra.mxu1 %v480_v43 }
  0x20   :  { %472 = vmatpush3.bf16.msra.mxu0 %v471_v17  ;;  %482 = vmatprep.subr.bf16.mxu1 %v574_v11  ;;  %v378_v17 = vld [vmem:[%s735_s2 + $0x4] ss:$0 sm:$0xff] }
  0x21   :  { %473 = vmatprep.subr.bf16.mxu0 %v574_v11 }
  0x23   :  { %484 = vmatpush3.bf16.msra.mxu1 %v483_v46 }
  0x24   :  { %475 = vmatpush3.bf16.msra.mxu0 %v474_v20  ;;  %485 = vmatprep.subr.bf16.mxu1 %v574_v11 }
  0x25   :  { %488 = vmatprep.subr.bf16.mxu0 %v574_v11 }
  0x27   :  { %487 = vmatpush3.bf16.msra.mxu1 %v486_v49 }
  0x87   :  { %v79_v35 = vpop.permute.xlu1 %78 }
  0xa2   :  { %v48_v3 = vpop.xlane.xlu0 %47 }
  0xa3   :  { %v50_v4 = vmul.f32 0.03125, %v48_v3  ;;  %v272_v3 = vld [vmem:[%s738_s5 + $0x28] sm:$0xff] }
  0xa5   :  { %v51_v5 = vsub.f32 %v628_v0, %v50_v4  ;;  %v495_v4 = vpack.c.bf16 %v272_v3, %v271_v2 }
  0xa7   :  { %v52_v6 = vmul.f32 %v51_v5, %v51_v5 }
  0xa9   :  { %v53_v7 = vsel %vm45_vm0, %v52_v6, 0.0  ;;  %v274_v6 = vld [vmem:[%s738_s5 + $0x38] sm:$0xff] }
  0xaa   :  { %54 = vadd.xlane.f32.xlu0 %v53_v7 }
 0x137   :  { %v55_v22 = vpop.xlane.xlu0 %54 }
 0x138   :  { %v56_v23 = vmul.f32 0.03125, %v55_v22 }
 0x13a   :  { %v57_v24 = vadd.f32 1e-05, %v56_v23 }
 0x13c   :  { %508 = vrsqrt.f32 %v57_v24 }
 0x146   :  { %v509_v25 = vpop.eup %508 }
 0x147   :  { %v59_v27 = vmul.f32 %v509_v25, %v51_v5  ;;  %v273_v5 = vld [vmem:[%s738_s5 + $0x30] sm:$0xff] }
 0x148   :  { %v498_v7 = vpack.c.bf16 %v274_v6, %v273_v5 }
 0x149   :  { %v64_v29 = vmul.f32 %v369_v26, %v59_v27 }
 0x14b   :  { %v69_v30 = vadd.f32 %v370_v28, %v64_v29 }
 0x14d   :  { %v371_v31 = vmul.f32 -1.442695, %v69_v30 }
 0x14f   :  { %510 = vpow2.f32 %v371_v31 }
 0x159   :  { %v511_v32 = vpop.eup %510 }
 0x15a   :  { %v73_v33 = vadd.f32 1.0, %v511_v32 }
 0x15c   :  { %512 = vrcp.f32 %v73_v33 }
 0x166   :  { %v513_v34 = vpop.eup %512 }
 0x167   :  { %v76_v36 = vmul.f32 %v513_v34, %v69_v30 }
 0x169   :  { %v81_v37 = vsel %vm45_vm0, %v76_v36, %v79_v35 }
 0x16a   :  { %424 = vmatmul.mubr.msk.f32.vlgmr.msra.gmra.mrb[0].mxu0 %vm94_vm2, %v81_v37 }
 0x16b   :  { %461 = vmatprep.mubr.msk.f32.mxu0 %vm575_vm1, %v576_v21  ;;  %490 = vmatpush3.bf16.msra.mxu0 %v489_v61 }
 0x16c   :  { %491 = vmatprep.subr.bf16.mxu0 %v574_v11 }
 0x16f   :  { %493 = vmatpush3.bf16.msra.mxu0 %v492_v1 }
 0x170   :  { %494 = vmatprep.subr.bf16.mxu0 %v574_v11 }
 0x173   :  { %496 = vmatpush3.bf16.msra.mxu0 %v495_v4 }
 0x174   :  { %497 = vmatprep.subr.bf16.mxu0 %v574_v11 }
 0x177   :  { %499 = vmatpush3.bf16.msra.mxu0 %v498_v7 }
 0x23d   :  { %v164_v51 = vpop.f32.mrb[0].mxu0 }
 0x23e   :  { %v165_v52 = vadd.f32 %v372_v50, %v164_v51  ;;  %v425_v53 = vpop.f32.mrb[1].mxu0 }
 0x240   :  { %v374_v54 = vmul.f32 -1.442695, %v165_v52 }
 0x242   :  { %514 = vpow2.f32 %v374_v54 }
 0x24c   :  { %v515_v55 = vpop.eup %514 }
 0x24d   :  { %v171_v56 = vadd.f32 1.0, %v515_v55 }
 0x24f   :  { %516 = vrcp.f32 %v171_v56 }
 0x259   :  { %v517_v57 = vpop.eup %516 }
 0x25a   :  { %v174_v58 = vmul.f32 %v517_v57, %v165_v52 }
 0x25c   :  { %443 = vmatmul.mubr.msk.f32.vlgmr.msra.gmra.mrb[0].mxu1 %vm94_vm2, %v174_v58 }
 0x32f   :  { %v256_v9 = vpop.f32.mrb[0].mxu1 }
 0x330   :  { %v257_v10 = vadd.f32 %v375_v8, %v256_v9  ;;  %v444_v12 = vpop.f32.mrb[1].mxu1 }
 0x332   :  { %v377_v13 = vmul.f32 -1.442695, %v257_v10 }
 0x334   :  { %518 = vpow2.f32 %v377_v13 }
 0x33e   :  { %v519_v11 = vpop.eup %518 }
 0x33f   :  { %v263_v14 = vadd.f32 1.0, %v519_v11 }
 0x341   :  { %520 = vrcp.f32 %v263_v14 }
 0x34b   :  { %v521_v15 = vpop.eup %520 }
 0x34c   :  { %v266_v16 = vmul.f32 %v521_v15, %v257_v10 }
 0x34e   :  { %462 = vmatmul.mubr.msk.f32.vlgmr.msra.gmra.mrb[2].mxu0 %vm94_vm2, %v266_v16 }
 0x421   :  { %v348_v18 = vpop.f32.mrb[2].mxu0 }
 0x422   :  { %v349_v19 = vadd.f32 %v378_v17, %v348_v18  ;;  %v463_v20 = vpop.f32.mrb[3].mxu0 }
 0x424   :  { %v352_v21 = vadd.f32 %v349_v19, %v628_v0 }
 0x426   :  { %353 = vst.msk [vmem:[#allocation5] sm:$0xff] %vm45_vm0, %v352_v21 }
 0x427   :  { %555 = shalt.err (!%p552_p12)
}
 0x428   :  { %s556_s2 = scalar_lea.hbm %s739_s6, 128 }
 0x429   :  { %p557_p13 = scmp.ne.s32.totalorder %s739_s6, %s556_s2  ;;  %p560_p0 = scmp.lt.u32.totalorder %s556_s2, %s739_s6 }
 0x42b   :  { %p562_p1 = pnand %p560_p0, %p557_p13 }
 0x42d   :  { %565 = shalt.err (!%p562_p1)
}
 0x42e   :  { %363 = dma.vmem_to_hbm [thread:$0]  %s361_s27, 128, %s739_s6, [#allocation4]  }
 0x42f   :  { %568 = dma.done.wait [#allocation4], 128  }
 0x430   :  { %569 = vsyncadd [#allocation4], 4294967168 }
 0x431   :  { %367 = vsyncpa [#allocation3], 1 }
 0x432   :  { %368 = vsyncpa [#allocation4], 1 }

</bundles_post_ra>
